<compile_context>
chip_gen: v5e
topology: v5e:2x2
jax: 0.10.0
libtpu: 0.0.40
codegen_flags: <defaults>
</compile_context>

<pallas_src>
import functools

import jax
import jax.numpy as jnp
import numpy as np
from jax.experimental import pallas as pl
from jax.experimental.pallas import tpu as pltpu

# Fixed Sobel weights (module parameters; deterministic, no grad) -- used only
# by the pure-JAX reference; the kernel uses the separable factorization.
_KX = ((-1.0, 0.0, 1.0),
       (-2.0, 0.0, 2.0),
       (-1.0, 0.0, 1.0))
_KY = (( 1.0,  2.0,  1.0),
       ( 0.0,  0.0,  0.0),
       (-1.0, -2.0, -1.0))


def _sobel_kernel(x_ref, o_ref, *, compute_dtype):
    # Block shape: (BC_TILE, H, W) -- BC_TILE full spatial planes per grid step.
    x = x_ref[...].astype(compute_dtype)
    _, H, W = x.shape

    # Boundary-validity masks (hoisted; O(H + W) construction, broadcast at use).
    row = jax.lax.broadcasted_iota(jnp.int32, (1, H, 1), 1)
    col = jax.lax.broadcasted_iota(jnp.int32, (1, 1, W), 2)
    not_top = row > 0          # x[i-1, :] exists
    not_bot = row < H - 1      # x[i+1, :] exists
    not_left = col > 0         # x[:, j-1] exists
    not_right = col < W - 1    # x[:, j+1] exists

    zero = jnp.zeros((), compute_dtype)

    # Vertical shifted copies (zero padded), shared by both filters.
    # jnp.roll (static shift) kept deliberately; wrapped elements are masked.
    up = jnp.where(not_top, jnp.roll(x, 1, axis=1), zero)      # up[i]   = x[i-1]
    down = jnp.where(not_bot, jnp.roll(x, -1, axis=1), zero)   # down[i] = x[i+1]

    s = (up + down) + (x + x)   # vertical smooth  [1, 2, 1]
    d = up - down               # vertical diff    [1, 0, -1]

    # Horizontal shifted copies of the two 1-D pass results.
    s_l = jnp.where(not_left, jnp.roll(s, 1, axis=2), zero)    # s[:, j-1]
    s_r = jnp.where(not_right, jnp.roll(s, -1, axis=2), zero)  # s[:, j+1]
    d_l = jnp.where(not_left, jnp.roll(d, 1, axis=2), zero)
    d_r = jnp.where(not_right, jnp.roll(d, -1, axis=2), zero)

    gx = s_r - s_l              # horizontal diff   [-1, 0, 1]  (cross-correlation)
    gy = (d_l + d_r) + (d + d)  # horizontal smooth [ 1, 2, 1]

    o_ref[...] = (jnp.abs(gx) + jnp.abs(gy)).astype(o_ref.dtype)


def _vmem_budget_bytes():
    """~75% of this generation's physical VMEM (compile/pipeline headroom)."""
    try:
        cap = int(pltpu.get_tpu_info().vmem_capacity_bytes)
    except Exception:
        cap = 64 << 20  # conservative fallback (smallest across v5e/v6e/v7x)
    return (cap * 3) // 4


def _pick_bc_tile(bc, plane_budget_bytes, vmem_budget_bytes, min_steps=4):
    """Planes fused per block: biggest that fits the VMEM budget while keeping
    a multi-step grid (software pipelining + both v7x TensorCores)."""
    # VMEM-budget cap (always allow at least one plane per block).
    max_tile = max(1, vmem_budget_bytes // max(plane_budget_bytes, 1))
    max_tile = min(max_tile, bc)
    # Guarantee >= min(bc, min_steps) grid steps.
    if bc > 1:
        steps_target = min(bc, min_steps)
        max_tile = min(max_tile, max(1, bc // steps_target))
    tile = max_tile
    # Prefer an even step count (balanced split across v7x's two TensorCores)
    # if it costs at most ~1/3 of the block size.
    if tile > 1 and pl.cdiv(bc, tile) % 2 == 1:
        for t in range(tile - 1, max(1, (2 * tile) // 3) - 1, -1):
            if pl.cdiv(bc, t) % 2 == 0:
                tile = t
                break
    return tile


def sobelxy(x):
    """x: (B, C, H, W) -> (B, C, H, W), |sobel_x(x)| + |sobel_y(x)| per channel."""
    B, C, H, W = x.shape
    bc = B * C
    x_flat = x.reshape(bc, H, W)

    # bf16 inputs keep bf16 compute/output (v6e/v7x win); otherwise f32.
    compute_dtype = jnp.bfloat16 if x.dtype == jnp.bfloat16 else jnp.float32
    io_isz = x.dtype.itemsize
    tmp_isz = 2 if compute_dtype == jnp.bfloat16 else 4

    plane_elems = H * W
    # Per-plane VMEM footprint: double-buffered input + output blocks plus
    # ~8 live plane-sized temporaries in the *compute* dtype.
    plane_budget = plane_elems * (2 * io_isz + 2 * io_isz + 8 * tmp_isz)
    vmem_budget = _vmem_budget_bytes()

    bc_tile = _pick_bc_tile(bc, plane_budget, vmem_budget)
    grid_steps = pl.cdiv(bc, bc_tile)  # ragged last block is fine (per-plane op)

    block_budget = bc_tile * plane_budget
    vmem_limit = int(min(vmem_budget, max(32 << 20, block_budget + (2 << 20))))

    kernel = functools.partial(_sobel_kernel, compute_dtype=compute_dtype)

    out_flat = pl.pallas_call(
        kernel,
        out_shape=jax.ShapeDtypeStruct((bc, H, W), x.dtype),
        grid_spec=pltpu.PrefetchScalarGridSpec(
            num_scalar_prefetch=0,
            grid=(grid_steps,),
            in_specs=[pl.BlockSpec((bc_tile, H, W), lambda i: (i, 0, 0))],
            out_specs=pl.BlockSpec((bc_tile, H, W), lambda i: (i, 0, 0)),
        ),
        compiler_params=pltpu.CompilerParams(
            dimension_semantics=("parallel",),
            vmem_limit_bytes=vmem_limit,
        ),
    )(x_flat)

    return out_flat.reshape(B, C, H, W)


def _sobelxy_ref(x):
    # Pure-JAX reference (same math as the PyTorch module) for verification.
    kx = jnp.asarray(_KX, jnp.float32).reshape(1, 1, 3, 3)
    ky = jnp.asarray(_KY, jnp.float32).reshape(1, 1, 3, 3)
    B, C, H, W = x.shape
    xf = x.reshape(B * C, 1, H, W).astype(jnp.float32)
    dn = jax.lax.conv_dimension_numbers(xf.shape, kx.shape, ("NCHW", "OIHW", "NCHW"))
    gx = jax.lax.conv_general_dilated(xf, kx, (1, 1), ((1, 1), (1, 1)), dimension_numbers=dn)
    gy = jax.lax.conv_general_dilated(xf, ky, (1, 1), ((1, 1), (1, 1)), dimension_numbers=dn)
    return (jnp.abs(gx) + jnp.abs(gy)).reshape(B, C, H, W).astype(x.dtype)


if __name__ == "__main__":
    key = jax.random.PRNGKey(0)
    B, C, H, W = 2, 4, 16, 16
    x = jax.random.normal(key, (B, C, H, W), dtype=jnp.float32)

    out = sobelxy(x)
    jax.block_until_ready(out)

    ref = _sobelxy_ref(x)
    np.testing.assert_allclose(np.asarray(out), np.asarray(ref), atol=1e-5, rtol=1e-5)

    print("KERNEL_OK")
</pallas_src>

<mosaic_0001>
module attributes {stable_mosaic.version = 11 : i64} {
  func.func @_sobel_kernel(%arg0: i32, %arg1: memref<2x16x16xf32, #tpu.memory_space<vmem>>, %arg2: memref<2x16x16xf32, #tpu.memory_space<vmem>>) attributes {dimension_semantics = [#tpu.dimension_semantics<parallel>], iteration_bounds = array<i64: 4>, scalar_prefetch = 0 : i64, scratch_operands = 0 : i64, tpu.core_type = #tpu.core_type<tc>, window_params = [{transform_indices = @transform_0, window_bounds = array<i64: 2, 16, 16>}, {transform_indices = @transform_1, window_bounds = array<i64: 2, 16, 16>}]} {
    %c0 = arith.constant 0 : index
    %c0_0 = arith.constant 0 : index
    %c0_1 = arith.constant 0 : index
    %0 = vector.load %arg1[%c0, %c0_0, %c0_1] : memref<2x16x16xf32, #tpu.memory_space<vmem>>, vector<2x16x16xf32>
    %1 = tpu.iota {dimensions = array<i32: 1>} : vector<1x16x1xi32>
    %2 = tpu.iota {dimensions = array<i32: 2>} : vector<1x1x16xi32>
    %c0_i32 = arith.constant 0 : i32
    %3 = vector.broadcast %c0_i32 : i32 to vector<1x16x1xi32>
    %4 = arith.cmpi sgt, %1, %3 : vector<1x16x1xi32>
    %c15_i32 = arith.constant 15 : i32
    %5 = vector.broadcast %c15_i32 : i32 to vector<1x16x1xi32>
    %6 = arith.cmpi slt, %1, %5 : vector<1x16x1xi32>
    %c0_i32_2 = arith.constant 0 : i32
    %7 = vector.broadcast %c0_i32_2 : i32 to vector<1x1x16xi32>
    %8 = arith.cmpi sgt, %2, %7 : vector<1x1x16xi32>
    %c15_i32_3 = arith.constant 15 : i32
    %9 = vector.broadcast %c15_i32_3 : i32 to vector<1x1x16xi32>
    %10 = arith.cmpi slt, %2, %9 : vector<1x1x16xi32>
    %11 = vector.extract_strided_slice %0 {offsets = [0, 15, 0], sizes = [2, 1, 16], strides = [1, 1, 1]} : vector<2x16x16xf32> to vector<2x1x16xf32>
    %12 = vector.extract_strided_slice %0 {offsets = [0, 0, 0], sizes = [2, 15, 16], strides = [1, 1, 1]} : vector<2x16x16xf32> to vector<2x15x16xf32>
    %13 = tpu.concatenate %11, %12 in 1 : vector<2x1x16xf32>, vector<2x15x16xf32> -> vector<2x16x16xf32>
    %cst = arith.constant 0.000000e+00 : f32
    %14 = vector.shape_cast %4 : vector<1x16x1xi1> to vector<1x16x1xi1>
    %15 = vector.broadcast %14 : vector<1x16x1xi1> to vector<2x16x16xi1>
    %16 = vector.broadcast %cst : f32 to vector<2x16x16xf32>
    %17 = arith.select %15, %13, %16 : vector<2x16x16xi1>, vector<2x16x16xf32>
    %18 = vector.extract_strided_slice %0 {offsets = [0, 1, 0], sizes = [2, 15, 16], strides = [1, 1, 1]} : vector<2x16x16xf32> to vector<2x15x16xf32>
    %19 = vector.extract_strided_slice %0 {offsets = [0, 0, 0], sizes = [2, 1, 16], strides = [1, 1, 1]} : vector<2x16x16xf32> to vector<2x1x16xf32>
    %20 = tpu.concatenate %18, %19 in 1 : vector<2x15x16xf32>, vector<2x1x16xf32> -> vector<2x16x16xf32>
    %cst_4 = arith.constant 0.000000e+00 : f32
    %21 = vector.shape_cast %6 : vector<1x16x1xi1> to vector<1x16x1xi1>
    %22 = vector.broadcast %21 : vector<1x16x1xi1> to vector<2x16x16xi1>
    %23 = vector.broadcast %cst_4 : f32 to vector<2x16x16xf32>
    %24 = arith.select %22, %20, %23 : vector<2x16x16xi1>, vector<2x16x16xf32>
    %25 = arith.addf %17, %24 : vector<2x16x16xf32>
    %26 = arith.addf %0, %0 : vector<2x16x16xf32>
    %27 = arith.addf %25, %26 : vector<2x16x16xf32>
    %28 = arith.subf %17, %24 : vector<2x16x16xf32>
    %29 = vector.extract_strided_slice %27 {offsets = [0, 0, 15], sizes = [2, 16, 1], strides = [1, 1, 1]} : vector<2x16x16xf32> to vector<2x16x1xf32>
    %30 = vector.extract_strided_slice %27 {offsets = [0, 0, 0], sizes = [2, 16, 15], strides = [1, 1, 1]} : vector<2x16x16xf32> to vector<2x16x15xf32>
    %31 = tpu.concatenate %29, %30 in 2 : vector<2x16x1xf32>, vector<2x16x15xf32> -> vector<2x16x16xf32>
    %cst_5 = arith.constant 0.000000e+00 : f32
    %32 = vector.shape_cast %8 : vector<1x1x16xi1> to vector<1x1x16xi1>
    %33 = vector.broadcast %32 : vector<1x1x16xi1> to vector<2x16x16xi1>
    %34 = vector.broadcast %cst_5 : f32 to vector<2x16x16xf32>
    %35 = arith.select %33, %31, %34 : vector<2x16x16xi1>, vector<2x16x16xf32>
    %36 = vector.extract_strided_slice %27 {offsets = [0, 0, 1], sizes = [2, 16, 15], strides = [1, 1, 1]} : vector<2x16x16xf32> to vector<2x16x15xf32>
    %37 = vector.extract_strided_slice %27 {offsets = [0, 0, 0], sizes = [2, 16, 1], strides = [1, 1, 1]} : vector<2x16x16xf32> to vector<2x16x1xf32>
    %38 = tpu.concatenate %36, %37 in 2 : vector<2x16x15xf32>, vector<2x16x1xf32> -> vector<2x16x16xf32>
    %cst_6 = arith.constant 0.000000e+00 : f32
    %39 = vector.shape_cast %10 : vector<1x1x16xi1> to vector<1x1x16xi1>
    %40 = vector.broadcast %39 : vector<1x1x16xi1> to vector<2x16x16xi1>
    %41 = vector.broadcast %cst_6 : f32 to vector<2x16x16xf32>
    %42 = arith.select %40, %38, %41 : vector<2x16x16xi1>, vector<2x16x16xf32>
    %43 = vector.extract_strided_slice %28 {offsets = [0, 0, 15], sizes = [2, 16, 1], strides = [1, 1, 1]} : vector<2x16x16xf32> to vector<2x16x1xf32>
    %44 = vector.extract_strided_slice %28 {offsets = [0, 0, 0], sizes = [2, 16, 15], strides = [1, 1, 1]} : vector<2x16x16xf32> to vector<2x16x15xf32>
    %45 = tpu.concatenate %43, %44 in 2 : vector<2x16x1xf32>, vector<2x16x15xf32> -> vector<2x16x16xf32>
    %cst_7 = arith.constant 0.000000e+00 : f32
    %46 = vector.shape_cast %8 : vector<1x1x16xi1> to vector<1x1x16xi1>
    %47 = vector.broadcast %46 : vector<1x1x16xi1> to vector<2x16x16xi1>
    %48 = vector.broadcast %cst_7 : f32 to vector<2x16x16xf32>
    %49 = arith.select %47, %45, %48 : vector<2x16x16xi1>, vector<2x16x16xf32>
    %50 = vector.extract_strided_slice %28 {offsets = [0, 0, 1], sizes = [2, 16, 15], strides = [1, 1, 1]} : vector<2x16x16xf32> to vector<2x16x15xf32>
    %51 = vector.extract_strided_slice %28 {offsets = [0, 0, 0], sizes = [2, 16, 1], strides = [1, 1, 1]} : vector<2x16x16xf32> to vector<2x16x1xf32>
    %52 = tpu.concatenate %50, %51 in 2 : vector<2x16x15xf32>, vector<2x16x1xf32> -> vector<2x16x16xf32>
    %cst_8 = arith.constant 0.000000e+00 : f32
    %53 = vector.shape_cast %10 : vector<1x1x16xi1> to vector<1x1x16xi1>
    %54 = vector.broadcast %53 : vector<1x1x16xi1> to vector<2x16x16xi1>
    %55 = vector.broadcast %cst_8 : f32 to vector<2x16x16xf32>
    %56 = arith.select %54, %52, %55 : vector<2x16x16xi1>, vector<2x16x16xf32>
    %57 = arith.subf %42, %35 : vector<2x16x16xf32>
    %58 = arith.addf %49, %56 : vector<2x16x16xf32>
    %59 = arith.addf %28, %28 : vector<2x16x16xf32>
    %60 = arith.addf %58, %59 : vector<2x16x16xf32>
    %61 = math.absf %57 : vector<2x16x16xf32>
    %62 = math.absf %60 : vector<2x16x16xf32>
    %63 = arith.addf %61, %62 : vector<2x16x16xf32>
    %c0_9 = arith.constant 0 : index
    %c0_10 = arith.constant 0 : index
    %c0_11 = arith.constant 0 : index
    %64 = vector.load %arg2[%c0_9, %c0_10, %c0_11] : memref<2x16x16xf32, #tpu.memory_space<vmem>>, vector<2x16x16xf32>
    tpu.vector_store %arg2[%c0_9, %c0_10, %c0_11], %63 {strides = array<i32>} : memref<2x16x16xf32, #tpu.memory_space<vmem>>, vector<2x16x16xf32>,
    return
  }
  func.func @transform_0(%arg0: i32) -> (i32, i32, i32) {
    %c0_i32 = arith.constant 0 : i32
    %c0_i32_0 = arith.constant 0 : i32
    %c0_i32_1 = arith.constant 0 : i32
    return %arg0, %c0_i32, %c0_i32_0 : i32, i32, i32
  }
  func.func @transform_1(%arg0: i32) -> (i32, i32, i32) {
    %c0_i32 = arith.constant 0 : i32
    %c0_i32_0 = arith.constant 0 : i32
    %c0_i32_1 = arith.constant 0 : i32
    return %arg0, %c0_i32, %c0_i32_0 : i32, i32, i32
  }
}

</mosaic_0001>

<bundles_post_ra>
// kernel: tpu_custom_call.1
= control target key start
LH: loop header
LB: loop body
LE: loop exit
PB: predicated region body
PF: predicated region fallthrough
CT: control target
= control target key end

     0   :  { %6 = vsyncpa [#allocation3], 0  ;;  %s937_s0 = inlined_call_operand.hbm [shape: f32[8,16,16], index: 0, kind: input, shape index: {}]   ;;  %s938_s1 = inlined_call_operand.hbm [shape: f32[8,16,16], index: 1, kind: output, shape index: {}]  }
   0x1   :  { %8 = vsyncpa [#allocation3 + $0x1], 0 }
   0x2   :  { %9 = vsyncpa [#allocation4], 0 }
   0x3   :  { %11 = vsyncpa [#allocation4 + $0x1], 0  ;;  %s676_s6 = smov 0   ;;  %s678_s7 = smov 0  }
   0x4   :  { %s680_s8 = smov 0   ;;  %s682_s9 = smov 0  }
   0x5 LB: > { %s697_s10 = sadd.s32 4294967295, %s656_s9   ;;  %s486_s11 = sadd.s32 4294967294, %s656_s9   ;;  %s656_s9 = sphi %s682_s9, %s947_s9   ;;  %s652_s8 = sphi %s680_s8, %s946_s8   ;;  %s648_s7 = sphi %s678_s7, %s945_s7   ;;  %s644_s6 = sphi %s676_s6, %s944_s6  }
   0x6   : > { %s701_s12 = sadd.s32 1, %s656_s9   ;;  %s24_s13 = sadd.s32 1, %s652_s8 }
   0x7   : > { %s21_s14 = ssub.s32 %s656_s9, %s701_s12  ;;  %p31_p0 = scmp.ne.s32.totalorder %s652_s8, %s648_s7 }
   0x8   : > { %p22_p1 = scmp.eq.s32.totalorder %s21_s14, 0  ;;  %p32_p2 = scmp.eq.s32.totalorder %s656_s9, 0 }
   0x9   : > { %p37_p3 = scmp.ne.s32.totalorder %s648_s7, %s644_s6  ;;  %p38_p4 = scmp.eq.s32.totalorder %s697_s10, 0 }
   0xa   : > { %s713_s15 = scalar_select %p22_p1, %s652_s8, %s24_s13  }
   0xb   : > { %p715_p5 = por %p32_p2, %p31_p0  ;;  %p719_p6 = por %p38_p4, %p37_p3 }
   0xc   : > { %p61_p7 = scmp.eq.s32.totalorder %s697_s10, 3  ;;  %p67_p8 = scmp.eq.s32.totalorder %s486_s11, 3 }
   0xd   : > { %p518_p9 = scmp.lt.s32.totalorder %s656_s9, 4  ;;  %s87_s20 = sand.u32 1, %s652_s8  }
   0xe   : > { %p725_p10 = por %p61_p7, %p31_p0  ;;  %p729_p11 = por %p67_p8, %p37_p3 }
   0xf   : > { %s503_s21 = sshll.u32 %s656_s9, 5  ;;  %s489_s22 = sshll.u32 %s87_s20, 5 }
  0x10   : > { %s97_s25 = scalar_lea.hbm %s937_s0, %s503_s21  ;;  %s91_s27 = scalar_lea.vmem [#allocation2], %s489_s22 }
  0x11   : > { %s98_s26 = sshll.u32 %s97_s25, 4  ;;  %s100_s28 = sshll.u32 %s91_s27, 4  ;;  %s99_s26 = int_to_ptr.hbm [resolvable:$true] %s98_s26  ;;  %s101_s28 = int_to_ptr.vmem [resolvable:$true] %s100_s28 }
  0x12   : > { %p740_p12 = pnand %p518_p9, %p715_p5  ;;  %p493_p13 = scmp.ge.s32.totalorder %s656_s9, 1 }
  0x13   : > { %p108_p0 = scmp.lt.s32.totalorder %s656_s9, 5  ;;  %s88_s30 = scalar_lea.sflag [#allocation3], %s87_s20 }
  0x14   : > { %s560_s2 = sshra.s32 %s99_s26, 4  ;;  %p564_p2 = pneg %p740_p12  ;;  %s561_s2 = int_to_ptr.hbm [resolvable:$true] %s560_s2 }
  0x15   : > { %s562_s3 = scalar_lea.hbm %s561_s2, 32  ;;  %s567_s11 = scalar_lea.hbm %s937_s0, 128 }
  0x16   : > { %p563_p1 = scmp.ne.s32.totalorder %s561_s2, %s562_s3  ;;  %p568_p5 = scmp.lt.s32.totalorder %s561_s2, %s937_s0 }
  0x17   : > { %p569_p7 = scmp.lt.s32.totalorder %s567_s11, %s562_s3 }
  0x18   : > { %p565_p3 = pnand %p564_p2, %p563_p1 }
  0x19   : > { %p570_p8 = por %p569_p7, %p568_p5 }
  0x1a   : > { %p566_p4 = pneg %p565_p3 }
  0x1c   : > { %p571_p9 = pnand %p570_p8, %p566_p4 }
  0x1e   : > { %574 = shalt.err (!%p571_p9)
}
  0x1f   : > { %s658_s16 = smov 128   ;;  %s659_s20 = smov 8  }
  0x20   : > { %513 = dma.hbm_to_vmem [thread:$0]  (!%p740_p12), %s99_s26, 512, %s101_s28, %s88_s30, %s658_s16, %s658_s16, %s659_s20  }
  0x21   : > { %p109_p1 = pnand %p493_p13, %p108_p0 }
  0x22   : > { %s761_s21 = sand.u32 (!%p109_p1), 1, %s648_s7  }
  0x23   : > { %112 = sbr.rel (%p109_p1) target bundleno = 261 (0x105), region = 24  ;;  %s494_s22 = sshll.u32 (!%p109_p1), %s761_s21, 5 }
  0x24   : > { %s115_s23 = scalar_lea.sflag (!%p109_p1), [#allocation3], %s761_s21  ;;  %s118_s24 = scalar_lea.vmem (!%p109_p1), [#allocation2], %s494_s22 }
  0x28   : > { %635 = dma.done.wait (%p719_p6), %s115_s23, 512  }
  0x29   : > { %637 = vsyncadd (%p719_p6), %s115_s23, 4294966784  ;;  %v144_v0 = vlaneseq  ;;  %v142_v3 = vld [vmem:[%s118_s24 + $0x10] sm:$0xff]  ;;  %v143_v4 = vld [vmem:[%s118_s24 + $0x18] sm:$0xff]  ;;  %vm163_vm1 = vcmask 1040384   ;;  %vm182_vm2 = vcmask 1046528   ;;  %s660_s17 = smov 113  }
  0x2a   : > { %v140_v5 = vld [vmem:[%s118_s24] sm:$0xff]  ;;  %v158_v6 = vrot.slane %v143_v4, 7  ;;  %v166_v7 = vrot.slane %v142_v3, 7  ;;  %v186_v8 = vrot.slane %v142_v3, 1  ;;  %v187_v9 = vrot.slane %v143_v4, 1  ;;  %v141_v10 = vld [vmem:[%s118_s24 + $0x8] sm:$0xff] }
  0x2b   : > { %v145_v1 = vshrl.u32 %v144_v0, 7  ;;  %v157_v11 = vrot.slane %v141_v10, 7  ;;  %v164_v12 = vrot.slane %v140_v5, 7  ;;  %v183_v13 = vrot.slane %v140_v5, 1  ;;  %s661_s25 = smov 1   ;;  %s662_s26 = smov 127  }
  0x2c   : > { %v173_v14 = vsel %vm163_vm1, %v158_v6, %v166_v7  ;;  %v188_v15 = vsel %vm182_vm2, %v186_v8, %v187_v9  ;;  %v211_v16 = vadd.f32 %v142_v3, %v142_v3  ;;  %v184_v17 = vrot.slane %v141_v10, 1  ;;  %s663_s27 = smov 15   ;;  %s875_s28 = scalar_lea.vmem [#allocation5], %s494_s22 }
  0x2d   : > { %v146_v2 = vadd.s32 8, %v145_v1  ;;  %vm149_vm0 = vcmp.gt.s32.totalorder %v145_v1, 0  ;;  %v172_v19 = vsel %vm163_vm1, %v157_v11, %v164_v12  ;;  %v209_v20 = vadd.f32 %v140_v5, %v140_v5  ;;  %s505_s29 = sshll.u32 %s697_s10, 5  ;;  %s410_s3 = sshll.u32 %s875_s28, 4  ;;  %s411_s3 = int_to_ptr.vmem [resolvable:$true] %s410_s3 }
  0x2e   : > { %v180_v18 = vsel %vm149_vm0, %v173_v14, 0.0  ;;  %v196_v21 = vsel %vm182_vm2, %v187_v9, %v186_v8  ;;  %v178_v23 = vsel %vm149_vm0, %v172_v19, 0.0  ;;  %v185_v24 = vsel %vm182_vm2, %v183_v13, %v184_v17  ;;  %s409_s2 = scalar_lea.hbm %s938_s1, %s505_s29  ;;  %s397_s5 = scalar_lea.sflag [#allocation4], %s761_s21 }
  0x2f   : > { %vm152_vm3 = vcmp.lt.s32.totalorder %v146_v2, 15  ;;  %v207_v22 = vadd.f32 %v188_v15, %v180_v18  ;;  %v205_v25 = vadd.f32 %v185_v24, %v178_v23  ;;  %v167_v26 = vsel %vm163_vm1, %v166_v7, %v158_v6  ;;  %s412_s4 = sshll.u32 %s409_s2, 4  ;;  %s610_s20 = scalar_lea.hbm %s938_s1, 128  ;;  %s413_s4 = int_to_ptr.hbm [resolvable:$true] %s412_s4 }
  0x30   : > { %v204_v27 = vsel %vm152_vm3, %v196_v21, 0.0  ;;  %v165_v29 = vsel %vm163_vm1, %v164_v12, %v157_v11  ;;  %v195_v31 = vsel %vm182_vm2, %v184_v17, %v183_v13  ;;  %v212_v33 = vadd.f32 %v143_v4, %v143_v4  ;;  %s604_s11 = sshra.s32 %s413_s4, 4  ;;  %s605_s11 = int_to_ptr.hbm [resolvable:$true] %s604_s11 }
  0x31   : > { %v215_v28 = vadd.f32 %v211_v16, %v207_v22  ;;  %v213_v30 = vadd.f32 %v209_v20, %v205_v25  ;;  %v208_v32 = vadd.f32 %v204_v27, %v167_v26  ;;  %v202_v34 = vsel %vm152_vm3, %v195_v31, 0.0  ;;  %s606_s13 = scalar_lea.hbm %s605_s11, 32  ;;  %p611_p0 = scmp.lt.s32.totalorder %s605_s11, %s938_s1 }
  0x32   : > { %v206_v35 = vadd.f32 %v202_v34, %v165_v29  ;;  %v210_v36 = vadd.f32 %v141_v10, %v141_v10  ;;  %v788_v39 = vsub.f32 %v178_v23, %v185_v24  ;;  %v790_v40 = vsub.f32 %v165_v29, %v202_v34  ;;  %p607_p6 = scmp.ne.s32.totalorder %s605_s11, %s606_s13  ;;  %p612_p2 = scmp.lt.s32.totalorder %s610_s20, %s606_s13 }
  0x33   : > { %229 = vrot.lane.b32.xlu1 %v215_v28, %s660_s17  ;;  %225 = vrot.lane.b32.xlu0 %v213_v30, %s660_s17  ;;  %v216_v37 = vadd.f32 %v212_v33, %v208_v32  ;;  %v796_v41 = vsub.f32 %v167_v26, %v204_v27  ;;  %v798_v42 = vsub.f32 %v180_v18, %v188_v15  ;;  %v817_v46 = vand.u32 127, %v144_v0 }
  0x34   : > { %237 = vrot.lane.b32.xlu2 %v213_v30, %s661_s25  ;;  %v214_v38 = vadd.f32 %v210_v36, %v206_v35  ;;  %vm249_vm4 = vcmask 7168   ;;  %vm284_vm6 = vcmask 121856   ;;  %vm391_vm8 = vcmask 130048   ;;  %p608_p12 = pnand %p607_p6, %p725_p10  ;;  %p613_p3 = por %p612_p2, %p611_p0 }
  0x35   : > { %vm153_vm5 = vcmp.gt.s32.totalorder %v817_v46, 0  ;;  %vm154_vm7 = vcmp.lt.s32.totalorder %v817_v46, 15 }
  0x36   : > { %p609_p13 = pneg %p608_p12 }
  0x38   : > { %p614_p4 = pnand %p613_p3, %p609_p13 }
  0x3b   : > { %231 = vrot.lane.b32.xlu1 %v216_v37, %s660_s17  ;;  %227 = vrot.lane.b32.xlu0 %v214_v38, %s660_s17 }
  0x3c   : > { %239 = vrot.lane.b32.xlu2 %v214_v38, %s661_s25 }
  0x43   : > { %243 = vrot.lane.b32.xlu1 %v216_v37, %s661_s25  ;;  %241 = vrot.lane.b32.xlu0 %v215_v28, %s661_s25 }
  0x44   : > { %260 = vrot.lane.b32.xlu2 %v213_v30, %s662_s26 }
  0x4b   : > { %264 = vrot.lane.b32.xlu1 %v215_v28, %s662_s26  ;;  %262 = vrot.lane.b32.xlu0 %v214_v38, %s662_s26 }
  0x4c   : > { %266 = vrot.lane.b32.xlu2 %v216_v37, %s662_s26 }
  0x53   : > { %274 = vrot.lane.b32.xlu1 %v214_v38, %s663_s27  ;;  %272 = vrot.lane.b32.xlu0 %v213_v30, %s663_s27 }
  0x54   : > { %276 = vrot.lane.b32.xlu2 %v215_v28, %s663_s27  ;;  %v372_v28 = vadd.f32 %v790_v40, %v790_v40 }
  0x5b   : > { %299 = vrot.lane.b32.xlu1 %v788_v39, %s660_s17  ;;  %278 = vrot.lane.b32.xlu0 %v216_v37, %s663_s27 }
  0x5c   : > { %301 = vrot.lane.b32.xlu2 %v790_v40, %s660_s17 }
  0x63   : > { %305 = vrot.lane.b32.xlu1 %v796_v41, %s660_s17  ;;  %303 = vrot.lane.b32.xlu0 %v798_v42, %s660_s17 }
  0x64   : > { %311 = vrot.lane.b32.xlu2 %v788_v39, %s661_s25 }
  0x6b   : > { %315 = vrot.lane.b32.xlu1 %v798_v42, %s661_s25  ;;  %313 = vrot.lane.b32.xlu0 %v790_v40, %s661_s25 }
  0x6c   : > { %317 = vrot.lane.b32.xlu2 %v796_v41, %s661_s25 }
  0x73   : > { %333 = vrot.lane.b32.xlu1 %v790_v40, %s662_s26  ;;  %331 = vrot.lane.b32.xlu0 %v788_v39, %s662_s26 }
  0x74   : > { %335 = vrot.lane.b32.xlu2 %v798_v42, %s662_s26 }
  0x7b   : > { %343 = vrot.lane.b32.xlu1 %v788_v39, %s663_s27  ;;  %337 = vrot.lane.b32.xlu0 %v796_v41, %s662_s26 }
  0x7c   : > { %345 = vrot.lane.b32.xlu2 %v790_v40, %s663_s27 }
  0x83   : > { %349 = vrot.lane.b32.xlu1 %v796_v41, %s663_s27  ;;  %347 = vrot.lane.b32.xlu0 %v798_v42, %s663_s27 }
  0x8e   : > { %v238_v43 = vpop.permute.xlu2 %237 }
  0x96   : > { %v240_v44 = vpop.permute.xlu2 %239 }
  0x9e   : > { %v261_v45 = vpop.permute.xlu2 %260 }
  0xa5   : > { %v230_v47 = vpop.permute.xlu1 %229  ;;  %v226_v48 = vpop.permute.xlu0 %225 }
  0xa6   : > { %v250_v49 = vsel %vm249_vm4, %v226_v48, %v238_v43  ;;  %v267_v50 = vpop.permute.xlu2 %266  ;;  %v371_v43 = vadd.f32 %v788_v39, %v788_v39 }
  0xa7   : > { %v823_v51 = vsel %vm153_vm5, %v250_v49, 0.0 }
  0xad   : > { %v232_v52 = vpop.permute.xlu1 %231  ;;  %v228_v53 = vpop.permute.xlu0 %227 }
  0xae   : > { %v251_v54 = vsel %vm249_vm4, %v228_v53, %v240_v44  ;;  %v277_v56 = vpop.permute.xlu2 %276 }
  0xaf   : > { %v257_v55 = vsel %vm153_vm5, %v251_v54, 0.0 }
  0xb5   : > { %v244_v57 = vpop.permute.xlu1 %243  ;;  %v242_v59 = vpop.permute.xlu0 %241 }
  0xb6   : > { %v253_v58 = vsel %vm249_vm4, %v232_v52, %v244_v57  ;;  %v252_v61 = vsel %vm249_vm4, %v230_v47, %v242_v59  ;;  %v302_v63 = vpop.permute.xlu2 %301 }
  0xb7   : > { %v831_v60 = vsel %vm153_vm5, %v253_v58, 0.0  ;;  %v836_v62 = vsel %vm153_vm5, %v252_v61, 0.0  ;;  %v373_v61 = vadd.f32 %v798_v42, %v798_v42 }
  0xbd   : > { %v265_v0 = vpop.permute.xlu1 %264  ;;  %v263_v2 = vpop.permute.xlu0 %262 }
  0xbe   : > { %v287_v1 = vsel %vm284_vm6, %v265_v0, %v277_v56  ;;  %v312_v6 = vpop.permute.xlu2 %311  ;;  %v374_v56 = vadd.f32 %v796_v41, %v796_v41 }
  0xbf   : > { %v842_v3 = vsel %vm154_vm7, %v287_v1, 0.0 }
  0xc0   : > { %v365_v4 = vsub.f32 %v842_v3, %v836_v62 }
  0xc2   : > { %v381_v46 = vand.u32 2147483647, %v365_v4 }
  0xc5   : > { %v275_v5 = vpop.permute.xlu1 %274  ;;  %v273_v8 = vpop.permute.xlu0 %272 }
  0xc6   : > { %v286_v7 = vsel %vm284_vm6, %v263_v2, %v275_v5  ;;  %v285_v10 = vsel %vm284_vm6, %v261_v45, %v273_v8  ;;  %v318_v17 = vpop.permute.xlu2 %317 }
  0xc7   : > { %v292_v9 = vsel %vm154_vm7, %v286_v7, 0.0  ;;  %v291_v12 = vsel %vm154_vm7, %v285_v10, 0.0 }
  0xc8   : > { %v364_v11 = vsub.f32 %v292_v9, %v257_v55  ;;  %v363_v13 = vsub.f32 %v291_v12, %v823_v51 }
  0xca   : > { %v380_v35 = vand.u32 2147483647, %v364_v11  ;;  %v379_v51 = vand.u32 2147483647, %v363_v13 }
  0xcd   : > { %v300_v14 = vpop.permute.xlu1 %299  ;;  %v279_v15 = vpop.permute.xlu0 %278 }
  0xce   : > { %v288_v16 = vsel %vm284_vm6, %v267_v50, %v279_v15  ;;  %v336_v22 = vpop.permute.xlu2 %335  ;;  %v323_v36 = vsel %vm249_vm4, %v300_v14, %v312_v6 }
  0xcf   : > { %v294_v18 = vsel %vm154_vm7, %v288_v16, 0.0  ;;  %v327_v47 = vsel %vm153_vm5, %v323_v36, 0.0 }
  0xd0   : > { %v366_v19 = vsub.f32 %v294_v18, %v831_v60 }
  0xd2   : > { %v382_v6 = vand.u32 2147483647, %v366_v19 }
  0xd5   : > { %v306_v20 = vpop.permute.xlu1 %305  ;;  %v304_v21 = vpop.permute.xlu0 %303 }
  0xd6   : > { %v346_v25 = vpop.permute.xlu2 %345  ;;  %v326_v39 = vsel %vm249_vm4, %v306_v20, %v318_v17 }
  0xd7   : > { %v330_v59 = vsel %vm153_vm5, %v326_v39, 0.0 }
  0xdd   : > { %v316_v23 = vpop.permute.xlu1 %315  ;;  %v314_v24 = vpop.permute.xlu0 %313 }
  0xde   : > { %v324_v26 = vsel %vm249_vm4, %v302_v63, %v314_v24  ;;  %v325_v53 = vsel %vm249_vm4, %v304_v21, %v316_v23 }
  0xdf   : > { %v328_v31 = vsel %vm153_vm5, %v324_v26, 0.0  ;;  %v329_v0 = vsel %vm153_vm5, %v325_v53, 0.0 }
  0xe5   : > { %v334_v27 = vpop.permute.xlu1 %333  ;;  %v332_v30 = vpop.permute.xlu0 %331 }
  0xe6   : > { %v356_v29 = vsel %vm284_vm6, %v334_v27, %v346_v25 }
  0xe7   : > { %v360_v32 = vsel %vm154_vm7, %v356_v29, 0.0 }
  0xe8   : > { %v368_v33 = vadd.f32 %v360_v32, %v328_v31 }
  0xea   : > { %v376_v34 = vadd.f32 %v372_v28, %v368_v33 }
  0xec   : > { %v384_v37 = vand.u32 2147483647, %v376_v34 }
  0xed   : > { %v344_v38 = vpop.permute.xlu1 %343  ;;  %v338_v45 = vpop.permute.xlu0 %337 }
  0xee   : > { %v388_v40 = vadd.f32 %v384_v37, %v380_v35  ;;  %v355_v44 = vsel %vm284_vm6, %v332_v30, %v344_v38 }
  0xef   : > { %v359_v48 = vsel %vm154_vm7, %v355_v44, 0.0 }
  0xf0   : > { %393 = vst.msk [vmem:[%s875_s28 + $0x8] sm:$0xff] %vm391_vm8, %v388_v40  ;;  %v367_v49 = vadd.f32 %v359_v48, %v327_v47 }
  0xf2   : > { %v375_v50 = vadd.f32 %v371_v43, %v367_v49 }
  0xf4   : > { %v383_v52 = vand.u32 2147483647, %v375_v50 }
  0xf5   : > { %v350_v54 = vpop.permute.xlu1 %349  ;;  %v348_v58 = vpop.permute.xlu0 %347 }
  0xf6   : > { %v387_v55 = vadd.f32 %v383_v52, %v379_v51  ;;  %v358_v57 = vsel %vm284_vm6, %v338_v45, %v350_v54  ;;  %v357_v63 = vsel %vm284_vm6, %v336_v22, %v348_v58 }
  0xf7   : > { %v362_v60 = vsel %vm154_vm7, %v358_v57, 0.0  ;;  %v361_v1 = vsel %vm154_vm7, %v357_v63, 0.0 }
  0xf8   : > { %392 = vst.msk [vmem:[%s875_s28] sm:$0xff] %vm391_vm8, %v387_v55  ;;  %v370_v41 = vadd.f32 %v362_v60, %v330_v59  ;;  %v369_v2 = vadd.f32 %v361_v1, %v329_v0 }
  0xfa   : > { %v378_v42 = vadd.f32 %v374_v56, %v370_v41  ;;  %v377_v5 = vadd.f32 %v373_v61, %v369_v2 }
  0xfc   : > { %v386_v7 = vand.u32 2147483647, %v378_v42  ;;  %v385_v8 = vand.u32 2147483647, %v377_v5 }
  0xfe   : > { %v390_v9 = vadd.f32 %v386_v7, %v382_v6  ;;  %v389_v10 = vadd.f32 %v385_v8, %v381_v46 }
 0x100   : > { %395 = vst.msk [vmem:[%s875_s28 + $0x18] sm:$0xff] %vm391_vm8, %v390_v9 }
 0x101   : > { %394 = vst.msk [vmem:[%s875_s28 + $0x10] sm:$0xff] %vm391_vm8, %v389_v10 }
 0x102   : > { %617 = shalt.err (!%p614_p4)
}
 0x103   : > { %s664_s21 = smov 128   ;;  %s665_s24 = smov 8  }
 0x104   : > { %508 = dma.vmem_to_hbm [thread:$0]  (%p725_p10), %s411_s3, 512, %s413_s4, %s397_s5, %s664_s21, %s664_s21, %s665_s24  }
 0x105 PF: > { %p519_p5 = scmp.ge.s32.totalorder %s656_s9, 2  ;;  %s427_s17 = sand.u32 1, %s644_s6  }
 0x106   : > { %s428_s25 = scalar_lea.sflag [#allocation4], %s427_s17 }
 0x107   : > { %p515_p7 = pnand %p519_p5, %p729_p11 }
 0x109   : > { %p516_p8 = pneg %p515_p7 }
 0x10b   : > { %639 = dma.done.wait (%p516_p8), %s428_s25, 512  }
 0x10c   : > { %641 = vsyncadd (%p516_p8), %s428_s25, 4294966784  ;;  %p14_p9 = scmp.ge.s32.totalorder %s701_s12, 6   ;;  %s944_s6 = smov %s648_s7 }
 0x10d   : > { %s945_s7 = smov %s652_s8  ;;  %s946_s8 = smov %s713_s15 }
 0x10e   : > { %s947_s9 = smov %s701_s12  ;;  %16 = sbr.rel (!%p14_p9) target bundleno = 5 (0x5), region = 69 }
 0x113   :  { %434 = vsyncpa [#allocation3], 1 }
 0x114   :  { %436 = vsyncpa [#allocation3 + $0x1], 1 }
 0x115   :  { %437 = vsyncpa [#allocation4], 1 }
 0x116   :  { %439 = vsyncpa [#allocation4 + $0x1], 1 }

</bundles_post_ra>
